<compile_context>
chip_gen: v6e
topology: v6e:2x2x1
jax: 0.10.0
libtpu: 0.0.40
codegen_flags: <defaults>
</compile_context>

<pallas_src>
import jax
import jax.numpy as jnp
from jax.experimental import pallas as pl
from jax.experimental.pallas import tpu as pltpu


def _cdiv(a, b):
    return (a + b - 1) // b


def _round_up(a, b):
    return _cdiv(a, b) * b


def _tpu_meta():
    """(generation, num_tensorcores, vmem_capacity_bytes) - heuristics only."""
    kind = ""
    try:
        kind = jax.devices()[0].device_kind.lower()
    except Exception:
        pass
    if "v7" in kind:
        gen, ntc = 7, 2
    elif "v6" in kind:
        gen, ntc = 6, 1
    elif "v5p" in kind:
        gen, ntc = 5, 2
    elif "v5" in kind:
        gen, ntc = 5, 1
    elif "v4" in kind:
        gen, ntc = 4, 2
    else:
        gen, ntc = 6, 1
    vmem_cap = (64 if gen >= 7 else 128) * 1024 * 1024
    try:
        cap = int(pltpu.get_tpu_info().vmem_capacity_bytes)
        if cap > 0:
            vmem_cap = cap
    except Exception:
        pass
    return gen, ntc, vmem_cap


def _pad2d(a, rows, cols):
    pr, pc = rows - a.shape[0], cols - a.shape[1]
    if pr or pc:
        a = jnp.pad(a, ((0, pr), (0, pc)))
    return a


def _mlp_kernel_resident(x_ref, w1_ref, b1_ref, w2_ref, b2_ref, o_ref):
    # Hidden dim not tiled: weights are VMEM-resident (DMA'd once per call).
    x = x_ref[...].astype(w1_ref.dtype)
    h = jnp.dot(x, w1_ref[...], preferred_element_type=jnp.float32)
    h = jnp.maximum(h + b1_ref[...], 0.0)
    # Dropout(p=0.0) is identity -> no-op.
    acc = jnp.dot(h.astype(w2_ref.dtype), w2_ref[...],
                  preferred_element_type=jnp.float32)
    o_ref[...] = (acc + b2_ref[...]).astype(o_ref.dtype)


def _mlp_kernel_reduce(x_ref, w1_ref, b1_ref, w2_ref, b2_ref, o_ref, acc_ref):
    k = pl.program_id(1)

    @pl.when(k == 0)
    def _():
        # Fold the fc2 bias into the accumulator init (saves an epilogue pass).
        acc_ref[...] = jnp.broadcast_to(b2_ref[...], acc_ref.shape)

    x = x_ref[...].astype(w1_ref.dtype)
    h = jnp.dot(x, w1_ref[...], preferred_element_type=jnp.float32)
    h = jnp.maximum(h + b1_ref[...], 0.0)
    # Dropout(p=0.0) is identity -> no-op.
    acc_ref[...] += jnp.dot(h.astype(w2_ref.dtype), w2_ref[...],
                            preferred_element_type=jnp.float32)

    @pl.when(k == pl.num_programs(1) - 1)
    def _():
        o_ref[...] = acc_ref[...].astype(o_ref.dtype)


def mlp_forward(x, w1, b1, w2, b2, *, tm=None, compute_dtype=jnp.bfloat16):
    """x: (B, S, E); w1: (E, H); b1: (H,); w2: (H, E); b2: (E,)."""
    B, S, E = x.shape
    H = w1.shape[1]
    M = B * S
    out_dtype = x.dtype

    gen, ntc, vmem_cap = _tpu_meta()

    csz = jnp.dtype(compute_dtype).itemsize
    x_isz = jnp.dtype(x.dtype).itemsize
    o_isz = jnp.dtype(out_dtype).itemsize

    Ep = _round_up(E, 128)
    Hp0 = _round_up(H, 128)

    # ---- Row tile: generation-aware, MXU / sublane aligned -----------------
    mxu_align = 256 if gen >= 6 else 128
    row_align = 16 if csz == 2 else 8
    if tm is None:
        tm = {7: 512, 6: 1024, 5: 512}.get(gen, 512)
    Mp_min = _round_up(M, row_align)
    if Mp_min <= tm:
        tm = Mp_min                       # single M tile covers everything
    else:
        tm = max(mxu_align, (tm // mxu_align) * mxu_align)
        if ntc > 1:                       # split M across TCs only if >1 TC
            per_core = _round_up(_cdiv(M, ntc), mxu_align)
            tm = max(mxu_align, min(tm, per_core))

    # ---- VMEM budgeting -----------------------------------------------------
    budget = int(0.75 * vmem_cap)

    def vmem_use(tm_, th_):
        wb = 2 * 2 * Ep * th_ * csz              # W1+W2 tiles, double-buffered
        xb = 2 * tm_ * Ep * x_isz                # x tile, double-buffered
        ob = 2 * tm_ * Ep * o_isz                # out tile, double-buffered
        ab = 0 if th_ >= Hp0 else tm_ * Ep * 4   # f32 accumulator (reduce mode)
        bb = 4 * (th_ + Ep) * 4                  # biases (tiny)
        return wb + xb + ob + ab + bb

    def shrink(t):
        t //= 2
        if t >= mxu_align:
            return (t // mxu_align) * mxu_align
        return max(row_align, (t // row_align) * row_align)

    # Prefer fully VMEM-resident weights (weights DMA'd exactly once per call).
    tm_res = tm
    while vmem_use(tm_res, Hp0) > budget and tm_res > max(row_align, 256):
        tm_res = shrink(tm_res)

    if vmem_use(tm_res, Hp0) <= budget:
        tm, th, Hp = tm_res, Hp0, Hp0
    else:
        th = min(512, Hp0)
        while th > 128 and vmem_use(tm, th) > budget:
            th -= 128
        while vmem_use(tm, th) > budget and tm > row_align:
            tm = shrink(tm)
        Hp = _round_up(Hp0, th)

    Mp = _round_up(M, tm)

    # ---- Operand prep (skip pads when already aligned; no x dtype copy) -----
    x2d = _pad2d(x.reshape(M, E), Mp, Ep)                     # original dtype
    w1p = _pad2d(w1.astype(compute_dtype), Ep, Hp)
    w2p = _pad2d(w2.astype(compute_dtype), Hp, Ep)
    b1p = _pad2d(b1.astype(jnp.float32).reshape(1, H), 1, Hp)
    b2p = _pad2d(b2.astype(jnp.float32).reshape(1, E), 1, Ep)

    grid_m = Mp // tm
    if th == Hp:
        grid = (grid_m,)
        kernel = _mlp_kernel_resident
        in_specs = [
            pl.BlockSpec((tm, Ep), lambda i: (i, 0)),   # x row tile
            pl.BlockSpec((Ep, Hp), lambda i: (0, 0)),   # W1 (resident)
            pl.BlockSpec((1, Hp), lambda i: (0, 0)),    # b1
            pl.BlockSpec((Hp, Ep), lambda i: (0, 0)),   # W2 (resident)
            pl.BlockSpec((1, Ep), lambda i: (0, 0)),    # b2
        ]
        out_specs = pl.BlockSpec((tm, Ep), lambda i: (i, 0))
        scratch_shapes = []
        dim_sem = ("parallel",)
        weight_streams = 1
    else:
        grid = (grid_m, Hp // th)
        kernel = _mlp_kernel_reduce
        in_specs = [
            pl.BlockSpec((tm, Ep), lambda i, k: (i, 0)),  # x row tile
            pl.BlockSpec((Ep, th), lambda i, k: (0, k)),  # W1 hidden tile
            pl.BlockSpec((1, th), lambda i, k: (0, k)),   # b1 hidden tile
            pl.BlockSpec((th, Ep), lambda i, k: (k, 0)),  # W2 hidden tile
            pl.BlockSpec((1, Ep), lambda i, k: (0, 0)),   # b2 (full)
        ]
        out_specs = pl.BlockSpec((tm, Ep), lambda i, k: (i, 0))
        scratch_shapes = [pltpu.VMEM((tm, Ep), jnp.float32)]
        dim_sem = ("parallel", "arbitrary")
        weight_streams = grid_m

    cost = pl.CostEstimate(
        flops=4 * Mp * Ep * Hp,  # two matmuls: 2*M*E*H each
        transcendentals=0,
        bytes_accessed=(Mp * Ep * x_isz
                        + weight_streams * 2 * Ep * Hp * csz
                        + 4 * (Hp + Ep)
                        + Mp * Ep * o_isz))

    out2d = pl.pallas_call(
        kernel,
        out_shape=jax.ShapeDtypeStruct((Mp, Ep), out_dtype),
        grid_spec=pltpu.PrefetchScalarGridSpec(
            num_scalar_prefetch=0,
            grid=grid,
            in_specs=in_specs,
            out_specs=out_specs,
            scratch_shapes=scratch_shapes),
        compiler_params=pltpu.CompilerParams(
            dimension_semantics=dim_sem,
            vmem_limit_bytes=int(0.85 * vmem_cap)),
        cost_estimate=cost,
    )(x2d, w1p, b1p, w2p, b2p)

    if (Mp, Ep) != (M, E):
        out2d = out2d[:M, :E]
    return out2d.reshape(B, S, E)


if __name__ == "__main__":
    # Small shapes consistent with the module: embed_dim=32, ratio=4 -> hidden=128
    B, S, E = 2, 8, 32
    H = int(E * 4.0)

    key = jax.random.PRNGKey(0)
    kx, kw1, kb1, kw2, kb2 = jax.random.split(key, 5)

    x = jax.random.normal(kx, (B, S, E), dtype=jnp.float32)
    # Deterministic synthetic parameters (roughly Linear-init scale).
    w1 = jax.random.normal(kw1, (E, H), dtype=jnp.float32) * (1.0 / jnp.sqrt(E))
    b1 = jax.random.normal(kb1, (H,), dtype=jnp.float32) * 0.01
    w2 = jax.random.normal(kw2, (H, E), dtype=jnp.float32) * (1.0 / jnp.sqrt(H))
    b2 = jax.random.normal(kb2, (E,), dtype=jnp.float32) * 0.01

    out = mlp_forward(x, w1, b1, w2, b2)
    out = jax.block_until_ready(out)

    # Reference with the same bf16 rounding of matmul inputs (f32 accumulation),
    # matching the kernel's compute recipe.
    f32 = jnp.float32
    xb = x.reshape(-1, E).astype(jnp.bfloat16).astype(f32)
    w1b = w1.astype(jnp.bfloat16).astype(f32)
    w2b = w2.astype(jnp.bfloat16).astype(f32)
    h_ref = jnp.maximum(xb @ w1b + b1, 0.0).astype(jnp.bfloat16).astype(f32)
    ref = (h_ref @ w2b + b2).reshape(B, S, E)

    err = float(jnp.max(jnp.abs(out - ref)))
    assert jnp.allclose(out, ref, atol=2e-3, rtol=2e-3), err

    print("KERNEL_OK")
</pallas_src>

<mosaic_0001>
module attributes {stable_mosaic.version = 11 : i64} {
  func.func @_mlp_kernel_resident(%arg0: i32, %arg1: memref<16x128xf32, #tpu.memory_space<vmem>>, %arg2: memref<128x128xbf16, #tpu.memory_space<vmem>>, %arg3: memref<1x128xf32, #tpu.memory_space<vmem>>, %arg4: memref<128x128xbf16, #tpu.memory_space<vmem>>, %arg5: memref<1x128xf32, #tpu.memory_space<vmem>>, %arg6: memref<16x128xf32, #tpu.memory_space<vmem>>) attributes {dimension_semantics = [#tpu.dimension_semantics<parallel>], iteration_bounds = array<i64: 1>, scalar_prefetch = 0 : i64, scratch_operands = 0 : i64, tpu.core_type = #tpu.core_type<tc>, window_params = [{transform_indices = @transform_0, window_bounds = array<i64: 16, 128>}, {pipeline_mode = #tpu.pipeline_mode<synchronous>, transform_indices = @transform_1, window_bounds = array<i64: 128, 128>}, {pipeline_mode = #tpu.pipeline_mode<synchronous>, transform_indices = @transform_2, window_bounds = array<i64: 1, 128>}, {pipeline_mode = #tpu.pipeline_mode<synchronous>, transform_indices = @transform_3, window_bounds = array<i64: 128, 128>}, {pipeline_mode = #tpu.pipeline_mode<synchronous>, transform_indices = @transform_4, window_bounds = array<i64: 1, 128>}, {transform_indices = @transform_5, window_bounds = array<i64: 16, 128>}]} {
    %c0 = arith.constant 0 : index
    %c0_0 = arith.constant 0 : index
    %0 = vector.load %arg1[%c0, %c0_0] : memref<16x128xf32, #tpu.memory_space<vmem>>, vector<16x128xf32>
    %1 = arith.truncf %0 : vector<16x128xf32> to vector<16x128xbf16>
    %c0_1 = arith.constant 0 : index
    %c0_2 = arith.constant 0 : index
    %2 = vector.load %arg2[%c0_1, %c0_2] : memref<128x128xbf16, #tpu.memory_space<vmem>>, vector<128x128xbf16>
    %cst = arith.constant dense<0.000000e+00> : vector<16x128xf32>
    %3 = tpu.matmul %1, %2, %cst {dimension_numbers = #tpu.dot_dimension_numbers<[1], [0], [0], [1], [0, 0, 1, 1], [], []>} : vector<16x128xbf16>, vector<128x128xbf16>, vector<16x128xf32> -> vector<16x128xf32>
    %c0_3 = arith.constant 0 : index
    %c0_4 = arith.constant 0 : index
    %4 = vector.load %arg3[%c0_3, %c0_4] : memref<1x128xf32, #tpu.memory_space<vmem>>, vector<1x128xf32>
    %5 = vector.broadcast %4 : vector<1x128xf32> to vector<16x128xf32>
    %6 = arith.addf %3, %5 : vector<16x128xf32>
    %cst_5 = arith.constant 0.000000e+00 : f32
    %7 = vector.broadcast %cst_5 : f32 to vector<16x128xf32>
    %8 = arith.maximumf %6, %7 : vector<16x128xf32>
    %9 = arith.truncf %8 : vector<16x128xf32> to vector<16x128xbf16>
    %c0_6 = arith.constant 0 : index
    %c0_7 = arith.constant 0 : index
    %10 = vector.load %arg4[%c0_6, %c0_7] : memref<128x128xbf16, #tpu.memory_space<vmem>>, vector<128x128xbf16>
    %cst_8 = arith.constant dense<0.000000e+00> : vector<16x128xf32>
    %11 = tpu.matmul %9, %10, %cst_8 {dimension_numbers = #tpu.dot_dimension_numbers<[1], [0], [0], [1], [0, 0, 1, 1], [], []>} : vector<16x128xbf16>, vector<128x128xbf16>, vector<16x128xf32> -> vector<16x128xf32>
    %c0_9 = arith.constant 0 : index
    %c0_10 = arith.constant 0 : index
    %12 = vector.load %arg5[%c0_9, %c0_10] : memref<1x128xf32, #tpu.memory_space<vmem>>, vector<1x128xf32>
    %13 = vector.broadcast %12 : vector<1x128xf32> to vector<16x128xf32>
    %14 = arith.addf %11, %13 : vector<16x128xf32>
    %c0_11 = arith.constant 0 : index
    %c0_12 = arith.constant 0 : index
    %15 = vector.load %arg6[%c0_11, %c0_12] : memref<16x128xf32, #tpu.memory_space<vmem>>, vector<16x128xf32>
    tpu.vector_store %arg6[%c0_11, %c0_12], %14 {strides = array<i32>} : memref<16x128xf32, #tpu.memory_space<vmem>>, vector<16x128xf32>,
    return
  }
  func.func @transform_0(%arg0: i32) -> (i32, i32) {
    %c0_i32 = arith.constant 0 : i32
    %c0_i32_0 = arith.constant 0 : i32
    return %arg0, %c0_i32 : i32, i32
  }
  func.func @transform_1(%arg0: i32) -> (i32, i32) {
    %c0_i32 = arith.constant 0 : i32
    %c0_i32_0 = arith.constant 0 : i32
    %c0_i32_1 = arith.constant 0 : i32
    return %c0_i32, %c0_i32_0 : i32, i32
  }
  func.func @transform_2(%arg0: i32) -> (i32, i32) {
    %c0_i32 = arith.constant 0 : i32
    %c0_i32_0 = arith.constant 0 : i32
    %c0_i32_1 = arith.constant 0 : i32
    return %c0_i32, %c0_i32_0 : i32, i32
  }
  func.func @transform_3(%arg0: i32) -> (i32, i32) {
    %c0_i32 = arith.constant 0 : i32
    %c0_i32_0 = arith.constant 0 : i32
    %c0_i32_1 = arith.constant 0 : i32
    return %c0_i32, %c0_i32_0 : i32, i32
  }
  func.func @transform_4(%arg0: i32) -> (i32, i32) {
    %c0_i32 = arith.constant 0 : i32
    %c0_i32_0 = arith.constant 0 : i32
    %c0_i32_1 = arith.constant 0 : i32
    return %c0_i32, %c0_i32_0 : i32, i32
  }
  func.func @transform_5(%arg0: i32) -> (i32, i32) {
    %c0_i32 = arith.constant 0 : i32
    %c0_i32_0 = arith.constant 0 : i32
    return %arg0, %c0_i32 : i32, i32
  }
}

</mosaic_0001>

<bundles_post_ra>
// kernel: tpu_custom_call.1
= control target key start
LH: loop header
LB: loop body
LE: loop exit
PB: predicated region body
PF: predicated region fallthrough
CT: control target
= control target key end

     0   :  { %10 = vsyncpa [#allocation3], 0  ;;  %s565_s0 = inlined_call_operand.hbm [shape: f32[16,128], index: 0, kind: input, shape index: {}]   ;;  %s566_s1 = inlined_call_operand.hbm [shape: bf16[128,128], index: 1, kind: input, shape index: {}]   ;;  %s567_s2 = inlined_call_operand.vmem [shape: f32[1,128], index: 2, kind: input, shape index: {}]   ;;  %s568_s3 = inlined_call_operand.hbm [shape: bf16[128,128], index: 3, kind: input, shape index: {}]   ;;  %s569_s4 = inlined_call_operand.vmem [shape: f32[1,128], index: 4, kind: input, shape index: {}]   ;;  %s570_s5 = inlined_call_operand.hbm [shape: f32[16,128], index: 5, kind: output, shape index: {}]  }
   0x1   :  { %11 = vsyncpa [#allocation6], 0 }
   0x2   :  { %12 = vsyncpa [#allocation4], 0  ;;  %s501_s18 = smov [#allocation5]  }
   0x3   :  { %s30_s19 = sshll.u32 %s501_s18, 4  ;;  %s31_s19 = int_to_ptr.vmem [resolvable:$true] %s30_s19 }
   0x4   :  { %s423_s20 = scalar_lea.vmem %s31_s19, 1024  ;;  %p428_p1 = scmp.lt.s32.totalorder %s31_s19, %s31_s19 }
   0x5   :  { %p424_p0 = scmp.ne.s32.totalorder %s31_s19, %s423_s20  ;;  %p429_p2 = scmp.lt.s32.totalorder %s423_s20, %s423_s20 }
   0x7   :  { %p430_p3 = por %p429_p2, %p428_p1 }
   0x9   :  { %p431_p4 = pnand %p430_p3, %p424_p0 }
   0xb   :  { %434 = shalt.err (!%p431_p4)
}
   0xc   :  { %s502_s21 = smov 64   ;;  %s503_s22 = smov 4  }
   0xd   :  { %36 = dma.hbm_to_vmem [thread:$0]  %s566_s1, 1024, %s31_s19, [#allocation6], %s502_s21, %s502_s21, %s503_s22  }
   0xe   :  { %s504_s25 = smov [#allocation2]  }
   0xf   :  { %s18_s26 = sshll.u32 %s504_s25, 4  ;;  %s19_s26 = int_to_ptr.vmem [resolvable:$true] %s18_s26 }
  0x10   :  { %s443_s27 = scalar_lea.vmem %s19_s26, 256  ;;  %p448_p6 = scmp.lt.s32.totalorder %s19_s26, %s19_s26 }
  0x11   :  { %p444_p5 = scmp.ne.s32.totalorder %s19_s26, %s443_s27  ;;  %p449_p7 = scmp.lt.s32.totalorder %s443_s27, %s443_s27 }
  0x13   :  { %p450_p8 = por %p449_p7, %p448_p6 }
  0x15   :  { %p451_p9 = pnand %p450_p8, %p444_p5 }
  0x17   :  { %454 = shalt.err (!%p451_p9)
}
  0x18   :  { %s505_s28 = smov 128   ;;  %s506_s29 = smov 8  }
  0x19   :  { %24 = dma.hbm_to_vmem [thread:$0]  %s565_s0, 256, %s19_s26, [#allocation3], %s505_s28, %s505_s28, %s506_s29  }
  0x1a   :  { %s507_s1 = smov [#allocation7]  }
  0x1b   :  { %s44_s7 = sshll.u32 %s507_s1, 4  ;;  %s45_s7 = int_to_ptr.vmem [resolvable:$true] %s44_s7 }
  0x1c   :  { %s463_s8 = scalar_lea.vmem %s45_s7, 1024  ;;  %p468_p11 = scmp.lt.s32.totalorder %s45_s7, %s45_s7 }
  0x1d   :  { %p464_p10 = scmp.ne.s32.totalorder %s45_s7, %s463_s8  ;;  %p469_p12 = scmp.lt.s32.totalorder %s463_s8, %s463_s8 }
  0x1f   :  { %p470_p13 = por %p469_p12, %p468_p11 }
  0x21   :  { %p471_p0 = pnand %p470_p13, %p464_p10 }
  0x23   :  { %474 = shalt.err (!%p471_p0)
}
  0x24   :  { %50 = dma.hbm_to_vmem [thread:$0]  %s568_s3, 1024, %s45_s7, [#allocation6], %s502_s21, %s502_s21, %s503_s22  }
  0x25   :  { %495 = dma.done.wait [#allocation3], 256  }
  0x26   :  { %496 = vsyncadd [#allocation3], 4294967040 }
  0x27   :  { %497 = dma.done.wait [#allocation6], 2048  }
  0x28   :  { %498 = vsyncadd [#allocation6], 4294965248  ;;  %v508_v0 = vmov 0.0   ;;  %vm509_vm0 = vmmov 0   ;;  %v399_v1 = vld [vmem:[#allocation5 + $0x38] sm:$0xff]   ;;  %v400_v2 = vld [vmem:[#allocation5 + $0x30] sm:$0xff]  }
  0x29   :  { %349 = vmatprep.subr.bf16.mxu0 %v508_v0  ;;  %365 = vmatprep.mubr.msk.bf16.mxu0 %vm509_vm0, %v508_v0  ;;  %v401_v3 = vld [vmem:[#allocation5 + $0x28] sm:$0xff]   ;;  %v407_v4 = vld [vmem:[#allocation7 + $0x38] sm:$0xff]   ;;  %v402_v5 = vld [vmem:[#allocation5 + $0x20] sm:$0xff]   ;;  %s510_s13 = smov [#allocation8]  }
  0x2a   :  { %369 = vmatprep.subr.bf16.mxu1 %v508_v0  ;;  %385 = vmatprep.mubr.msk.bf16.mxu1 %vm509_vm0, %v508_v0  ;;  %v408_v6 = vld [vmem:[#allocation7 + $0x30] sm:$0xff]   ;;  %v403_v7 = vld [vmem:[#allocation5 + $0x18] sm:$0xff]   ;;  %v409_v8 = vld [vmem:[#allocation7 + $0x28] sm:$0xff]   ;;  %s300_s14 = sshll.u32 %s510_s13, 4  ;;  %s301_s14 = int_to_ptr.vmem [resolvable:$true] %s300_s14 }
  0x2b   :  { %350 = vmatpush3.bf16.msra.mxu0 %v399_v1  ;;  %370 = vmatpush3.bf16.msra.mxu1 %v407_v4  ;;  %v404_v9 = vld [vmem:[#allocation5 + $0x10] sm:$0xff]   ;;  %v410_v10 = vld [vmem:[#allocation7 + $0x20] sm:$0xff]   ;;  %v405_v11 = vld [vmem:[#allocation5 + $0x8] sm:$0xff]   ;;  %p480_p2 = scmp.lt.s32.totalorder %s301_s14, %s301_s14 }
  0x2c   :  { %351 = vmatprep.subr.bf16.mxu0 %v508_v0  ;;  %371 = vmatprep.subr.bf16.mxu1 %v508_v0  ;;  %v411_v12 = vld [vmem:[#allocation7 + $0x18] sm:$0xff]   ;;  %v406_v13 = vld [vmem:[#allocation5] sm:$0xff]   ;;  %v63_v14 = vld [vmem:[#allocation2] sm:$0xff] }
  0x2d   :  { %v64_v15 = vld [vmem:[#allocation2 + $0x8] sm:$0xff]  ;;  %v412_v17 = vld [vmem:[#allocation7 + $0x10] sm:$0xff]   ;;  %v413_v18 = vld [vmem:[#allocation7 + $0x8] sm:$0xff]  }
  0x2e   :  { %v65_v16 = vpack.c.bf16 %v64_v15, %v63_v14  ;;  %v414_v19 = vld [vmem:[#allocation7] sm:$0xff]   ;;  %v313_v20 = vld [vmem:[%s567_s2] ss:$0 sm:$0xff]  ;;  %s475_s2 = scalar_lea.vmem %s301_s14, 256 }
  0x2f   :  { %352 = vmatpush3.bf16.msra.mxu0 %v400_v2  ;;  %372 = vmatpush3.bf16.msra.mxu1 %v408_v6  ;;  %v322_v30 = vld [vmem:[%s569_s4] ss:$0 sm:$0xff]  ;;  %p476_p1 = scmp.ne.s32.totalorder %s301_s14, %s475_s2  ;;  %p481_p3 = scmp.lt.s32.totalorder %s475_s2, %s475_s2 }
  0x30   :  { %353 = vmatprep.subr.bf16.mxu0 %v508_v0  ;;  %373 = vmatprep.subr.bf16.mxu1 %v508_v0 }
  0x31   :  { %p482_p4 = por %p481_p3, %p480_p2 }
  0x33   :  { %354 = vmatpush3.bf16.msra.mxu0 %v401_v3  ;;  %374 = vmatpush3.bf16.msra.mxu1 %v409_v8  ;;  %p483_p5 = pnand %p482_p4, %p476_p1 }
  0x34   :  { %355 = vmatprep.subr.bf16.mxu0 %v508_v0  ;;  %375 = vmatprep.subr.bf16.mxu1 %v508_v0 }
  0x37   :  { %356 = vmatpush3.bf16.msra.mxu0 %v402_v5  ;;  %376 = vmatpush3.bf16.msra.mxu1 %v410_v10 }
  0x38   :  { %357 = vmatprep.subr.bf16.mxu0 %v508_v0  ;;  %377 = vmatprep.subr.bf16.mxu1 %v508_v0 }
  0x3b   :  { %358 = vmatpush3.bf16.msra.mxu0 %v403_v7  ;;  %378 = vmatpush3.bf16.msra.mxu1 %v411_v12 }
  0x3c   :  { %359 = vmatprep.subr.bf16.mxu0 %v508_v0  ;;  %379 = vmatprep.subr.bf16.mxu1 %v508_v0 }
  0x3f   :  { %360 = vmatpush3.bf16.msra.mxu0 %v404_v9  ;;  %380 = vmatpush3.bf16.msra.mxu1 %v412_v17 }
  0x40   :  { %361 = vmatprep.subr.bf16.mxu0 %v508_v0  ;;  %381 = vmatprep.subr.bf16.mxu1 %v508_v0 }
  0x43   :  { %362 = vmatpush3.bf16.msra.mxu0 %v405_v11  ;;  %382 = vmatpush3.bf16.msra.mxu1 %v413_v18 }
  0x44   :  { %363 = vmatprep.subr.bf16.mxu0 %v508_v0  ;;  %383 = vmatprep.subr.bf16.mxu1 %v508_v0 }
  0x47   :  { %364 = vmatpush3.bf16.msra.mxu0 %v406_v13  ;;  %384 = vmatpush3.bf16.msra.mxu1 %v414_v19 }
  0x4a   :  { %366 = vmatmul.mubr.bf16.vlgmr.msra.gmra.mxu0 %v65_v16 }
 0x10a   :  { %v171_v21 = vpop.f32.mrf.mxu0 }
 0x10b   :  { %v172_v23 = vadd.f32 %v313_v20, %v171_v21 }
 0x10c   :  { %v367_v22 = vpop.f32.mrf.mxu0 }
 0x10d   :  { %v178_v27 = vmax.f32 %v172_v23, 0.0 }
 0x10e   :  { %v174_v24 = vpop.f32.mrf.mxu0 }
 0x10f   :  { %v175_v25 = vadd.f32 %v313_v20, %v174_v24 }
 0x110   :  { %v368_v26 = vpop.f32.mrf.mxu0 }
 0x111   :  { %v179_v28 = vmax.f32 %v175_v25, 0.0 }
 0x113   :  { %v180_v29 = vpack.c.bf16 %v179_v28, %v178_v27 }
 0x115   :  { %386 = vmatmul.mubr.bf16.vlgmr.msra.gmra.mxu1 %v180_v29 }
 0x1d5   :  { %v286_v31 = vpop.f32.mrf.mxu1 }
 0x1d6   :  { %v287_v32 = vadd.f32 %v322_v30, %v286_v31 }
 0x1d7   :  { %v387_v33 = vpop.f32.mrf.mxu1 }
 0x1d8   :  { %293 = vst [vmem:[#allocation8] sm:$0xff] %v287_v32 }
 0x1d9   :  { %v289_v34 = vpop.f32.mrf.mxu1 }
 0x1da   :  { %v290_v35 = vadd.f32 %v322_v30, %v289_v34 }
 0x1db   :  { %v388_v36 = vpop.f32.mrf.mxu1 }
 0x1dc   :  { %294 = vst [vmem:[#allocation8 + $0x8] sm:$0xff] %v290_v35 }
 0x1dd   :  { %486 = shalt.err (!%p483_p5)
}
 0x1de   :  { %306 = dma.vmem_to_hbm [thread:$0]  %s301_s14, 256, %s570_s5, [#allocation4], %s505_s28, %s505_s28, %s506_s29  }
 0x1df   :  { %499 = dma.done.wait [#allocation4], 256  }
 0x1e0   :  { %500 = vsyncadd [#allocation4], 4294967040 }
 0x1e1   :  { %310 = vsyncpa [#allocation3], 1 }
 0x1e2   :  { %311 = vsyncpa [#allocation6], 1 }
 0x1e3   :  { %312 = vsyncpa [#allocation4], 1 }

</bundles_post_ra>
